<compile_context>
chip_gen: v6e
topology: v6e:2x2x1
jax: 0.10.0
libtpu: 0.0.40
codegen_flags: <defaults>
</compile_context>

<pallas_src>
import math

import jax
import jax.numpy as jnp
from jax.experimental import pallas as pl
from jax.experimental.pallas import tpu as pltpu


def _patch_embed_kernel(x_ref, w_ref, pe_ref, o_ref):
    # x_ref : (ROWS, P)  -- TB whole (batch*channel) slabs, N patches each (ROWS = TB*N)
    # w_ref : (P, D)     -- value-embedding weight (Linear.weight.T), resident
    # pe_ref: (ROWS, D)  -- positional embedding pre-tiled to the block rows, resident
    # o_ref : (ROWS, D)
    y = jnp.dot(x_ref[...], w_ref[...], preferred_element_type=jnp.float32)
    o_ref[...] = (y + pe_ref[...]).astype(o_ref.dtype)


def _pick_tb(BC, N, P, D, itemsize=4, tile_budget_bytes=8 * 1024 * 1024):
    """Pick how many (batch*channel) slabs go into one grid step.

    Constraints:
      * (TB * N) % 8 == 0 so the row-blocked BlockSpecs are sublane-aligned
        (or fall back to a single full-extent block, which is always legal).
      * Double-buffered in/out/PE VMEM footprint (lane-padded to 128) fits a
        conservative budget that also works inside v7x's 64 MiB VMEM.
      * Prefer >= 2 grid steps so multi-TensorCore chips (v7x) can shard the
        "parallel" axis.
    """
    def vmem_bytes(tb):
        rows = tb * N
        in_b = rows * max(P, 128) * itemsize    # lane-padded VMEM tile
        out_b = rows * max(D, 128) * itemsize
        pe_b = rows * max(D, 128) * itemsize
        return 2 * (in_b + out_b + pe_b)        # 2-deep pipeline buffers

    def ok(tb):
        return (tb * N) % 8 == 0 and vmem_bytes(tb) <= tile_budget_bytes

    upper = BC // 2 if BC >= 2 else BC
    cands = [tb for tb in range(1, upper + 1) if ok(tb)]
    if not cands:
        cands = [tb for tb in range(1, BC + 1) if ok(tb)]
    if not cands:
        return BC  # single block equal to the full array extent (always layout-legal)
    return max(cands)


def patch_embedding_linear(x, weight, *, patch_len, stride, d_model):
    """Forward pass of PatchEmbedding_Linear.

    x:      (B, L, C) float32
    weight: (patch_len, d_model) float32  (== nn.Linear.weight.T)
    returns (B*C, N, d_model) float32
    """
    B, L, C = x.shape
    if L % stride != 0:
        length = (L // stride + 1) * stride
        pad = length - L
        # replicate pad along time axis == F.pad(x, (0,0,0,pad), mode='replicate')
        x = jnp.concatenate([x, jnp.repeat(x[:, -1:, :], pad, axis=1)], axis=1)
    else:
        length = L

    N = (length - patch_len) // stride + 1
    BC = B * C

    # permute (B, L, C) -> (B, C, L_pad): same as the module's x.permute(0, 2, 1)
    x_bcl = jnp.transpose(x, (0, 2, 1))

    if stride == patch_len and N * patch_len == length:
        # Non-overlapping unfold is a pure reshape: no HBM-materialized gather copy.
        patches_2d = x_bcl.reshape(BC * N, patch_len)
    else:
        # Overlapping / gapped patches: gather in the wrapper.
        # TODO(synk): for stride < patch_len, build patch rows in-kernel with
        # strided pl.ds reads on the raw series to avoid inflating HBM traffic
        # by patch_len/stride.
        idx = jnp.arange(N)[:, None] * stride + jnp.arange(patch_len)[None, :]
        patches_2d = x_bcl[:, :, idx].reshape(BC * N, patch_len)

    # Positional-embedding table (same formula as PositionalEmbedding), built once.
    position = jnp.arange(N, dtype=jnp.float32)[:, None]
    div_term = jnp.exp(
        jnp.arange(0, d_model, 2, dtype=jnp.float32) * -(math.log(10000.0) / d_model)
    )
    pe = jnp.zeros((N, d_model), dtype=jnp.float32)
    pe = pe.at[:, 0::2].set(jnp.sin(position * div_term))
    pe = pe.at[:, 1::2].set(jnp.cos(position * div_term))

    TB = _pick_tb(BC, N, patch_len, d_model)
    rows_per_block = TB * N
    num_blocks = pl.cdiv(BC, TB)
    padded_rows = num_blocks * rows_per_block
    rows = BC * N
    if padded_rows != rows:
        patches_2d = jnp.pad(patches_2d, ((0, padded_rows - rows), (0, 0)))

    # PE pre-tiled once to the block row count (hoisted; every block reuses it).
    pe_block = jnp.tile(pe, (TB, 1))  # (rows_per_block, d_model)

    out2d = pl.pallas_call(
        _patch_embed_kernel,
        out_shape=jax.ShapeDtypeStruct((padded_rows, d_model), x.dtype),
        grid_spec=pltpu.PrefetchScalarGridSpec(
            num_scalar_prefetch=0,
            grid=(num_blocks,),
            in_specs=[
                pl.BlockSpec((rows_per_block, patch_len), lambda i: (i, 0)),
                pl.BlockSpec((patch_len, d_model), lambda i: (0, 0)),
                pl.BlockSpec((rows_per_block, d_model), lambda i: (0, 0)),
            ],
            out_specs=pl.BlockSpec((rows_per_block, d_model), lambda i: (i, 0)),
        ),
        compiler_params=pltpu.CompilerParams(
            dimension_semantics=("parallel",),
            vmem_limit_bytes=48 * 1024 * 1024,
        ),
    )(patches_2d, weight, pe_block)

    out = out2d[:rows].reshape(BC, N, d_model)

    # Dropout: eval-mode identity.
    # TODO(synk): training-mode dropout (random mask + 1/(1-p) scaling) not implemented.
    return out


if __name__ == "__main__":
    # Small, module-consistent shapes.
    B, L, C = 2, 16, 4
    patch_len, stride, d_model = 8, 8, 32

    key = jax.random.PRNGKey(0)
    kx, kw = jax.random.split(key)
    x = jax.random.normal(kx, (B, L, C), dtype=jnp.float32)
    # Deterministic init of nn.Linear(patch_len, d_model, bias=False) weight,
    # stored pre-transposed as (patch_len, d_model).
    weight = 0.02 * jax.random.normal(kw, (patch_len, d_model), dtype=jnp.float32)

    out = patch_embedding_linear(
        x, weight, patch_len=patch_len, stride=stride, d_model=d_model
    )
    out = jax.block_until_ready(out)

    # Pure-JAX reference of the same math (uses the explicit gather-style unfold).
    N = (L - patch_len) // stride + 1
    x_bcl = jnp.transpose(x, (0, 2, 1))
    idx = jnp.arange(N)[:, None] * stride + jnp.arange(patch_len)[None, :]
    ref_patches = x_bcl[:, :, idx].reshape(B * C, N, patch_len)
    position = jnp.arange(N, dtype=jnp.float32)[:, None]
    div_term = jnp.exp(
        jnp.arange(0, d_model, 2, dtype=jnp.float32) * -(math.log(10000.0) / d_model)
    )
    pe = jnp.zeros((N, d_model), dtype=jnp.float32)
    pe = pe.at[:, 0::2].set(jnp.sin(position * div_term))
    pe = pe.at[:, 1::2].set(jnp.cos(position * div_term))
    ref = ref_patches @ weight + pe[None]

    assert out.shape == (B * C, N, d_model), out.shape
    assert jnp.allclose(out, ref, atol=1e-5, rtol=1e-5)
    print("KERNEL_OK")
</pallas_src>

<mosaic_0001>
module attributes {stable_mosaic.version = 11 : i64} {
  func.func @_patch_embed_kernel(%arg0: i32, %arg1: memref<8x8xf32, #tpu.memory_space<vmem>>, %arg2: memref<8x32xf32, #tpu.memory_space<vmem>>, %arg3: memref<8x32xf32, #tpu.memory_space<vmem>>, %arg4: memref<8x32xf32, #tpu.memory_space<vmem>>) attributes {dimension_semantics = [#tpu.dimension_semantics<parallel>], iteration_bounds = array<i64: 2>, scalar_prefetch = 0 : i64, scratch_operands = 0 : i64, tpu.core_type = #tpu.core_type<tc>, window_params = [{transform_indices = @transform_0, window_bounds = array<i64: 8, 8>}, {pipeline_mode = #tpu.pipeline_mode<synchronous>, transform_indices = @transform_1, window_bounds = array<i64: 8, 32>}, {pipeline_mode = #tpu.pipeline_mode<synchronous>, transform_indices = @transform_2, window_bounds = array<i64: 8, 32>}, {transform_indices = @transform_3, window_bounds = array<i64: 8, 32>}]} {
    %c0 = arith.constant 0 : index
    %c0_0 = arith.constant 0 : index
    %0 = vector.load %arg1[%c0, %c0_0] : memref<8x8xf32, #tpu.memory_space<vmem>>, vector<8x8xf32>
    %c0_1 = arith.constant 0 : index
    %c0_2 = arith.constant 0 : index
    %1 = vector.load %arg2[%c0_1, %c0_2] : memref<8x32xf32, #tpu.memory_space<vmem>>, vector<8x32xf32>
    %cst = arith.constant dense<0.000000e+00> : vector<8x32xf32>
    %2 = tpu.matmul %0, %1, %cst {dimension_numbers = #tpu.dot_dimension_numbers<[1], [0], [0], [1], [0, 0, 1, 1], [], []>} : vector<8x8xf32>, vector<8x32xf32>, vector<8x32xf32> -> vector<8x32xf32>
    %c0_3 = arith.constant 0 : index
    %c0_4 = arith.constant 0 : index
    %3 = vector.load %arg3[%c0_3, %c0_4] : memref<8x32xf32, #tpu.memory_space<vmem>>, vector<8x32xf32>
    %4 = arith.addf %2, %3 : vector<8x32xf32>
    %c0_5 = arith.constant 0 : index
    %c0_6 = arith.constant 0 : index
    %5 = vector.load %arg4[%c0_5, %c0_6] : memref<8x32xf32, #tpu.memory_space<vmem>>, vector<8x32xf32>
    tpu.vector_store %arg4[%c0_5, %c0_6], %4 {strides = array<i32>} : memref<8x32xf32, #tpu.memory_space<vmem>>, vector<8x32xf32>,
    return
  }
  func.func @transform_0(%arg0: i32) -> (i32, i32) {
    %c0_i32 = arith.constant 0 : i32
    %c0_i32_0 = arith.constant 0 : i32
    return %arg0, %c0_i32 : i32, i32
  }
  func.func @transform_1(%arg0: i32) -> (i32, i32) {
    %c0_i32 = arith.constant 0 : i32
    %c0_i32_0 = arith.constant 0 : i32
    %c0_i32_1 = arith.constant 0 : i32
    return %c0_i32, %c0_i32_0 : i32, i32
  }
  func.func @transform_2(%arg0: i32) -> (i32, i32) {
    %c0_i32 = arith.constant 0 : i32
    %c0_i32_0 = arith.constant 0 : i32
    %c0_i32_1 = arith.constant 0 : i32
    return %c0_i32, %c0_i32_0 : i32, i32
  }
  func.func @transform_3(%arg0: i32) -> (i32, i32) {
    %c0_i32 = arith.constant 0 : i32
    %c0_i32_0 = arith.constant 0 : i32
    return %arg0, %c0_i32 : i32, i32
  }
}

</mosaic_0001>

<bundles_post_ra>
// kernel: tpu_custom_call.1
= control target key start
LH: loop header
LB: loop body
LE: loop exit
PB: predicated region body
PF: predicated region fallthrough
CT: control target
= control target key end

     0   :  { %8 = vsyncpa [#allocation3], 0  ;;  %s561_s0 = inlined_call_operand.vmem [shape: f32[16,8], index: 0, kind: input, shape index: {}]   ;;  %s562_s1 = inlined_call_operand.vmem [shape: f32[8,32], index: 1, kind: input, shape index: {}]   ;;  %s563_s2 = inlined_call_operand.vmem [shape: f32[8,32], index: 2, kind: input, shape index: {}]   ;;  %s564_s3 = inlined_call_operand.hbm [shape: f32[16,32], index: 3, kind: output, shape index: {}]  }
   0x1   :  { %10 = vsyncpa [#allocation3 + $0x1], 0  ;;  %s462_s12 = smov 0   ;;  %s464_s13 = smov 0  }
   0x2   :  { %s466_s14 = smov 0   ;;  %s468_s15 = smov 0  }
   0x3 LB: > { %s483_s16 = sadd.s32 4294967295, %s437_s15   ;;  %s318_s17 = sadd.s32 4294967294, %s437_s15   ;;  %s437_s15 = sphi %s468_s15, %s570_s15   ;;  %s433_s14 = sphi %s466_s14, %s569_s14   ;;  %s429_s13 = sphi %s464_s13, %s568_s13   ;;  %s425_s12 = sphi %s462_s12, %s567_s12  }
   0x4   : > { %s487_s18 = sadd.s32 1, %s437_s15   ;;  %s91_s19 = sadd.s32 1, %s433_s14 }
   0x5   : > { %s88_s20 = ssub.s32 %s437_s15, %s487_s18  ;;  %p101_p0 = scmp.ne.s32.totalorder %s433_s14, %s429_s13 }
   0x6   : > { %p89_p1 = scmp.eq.s32.totalorder %s88_s20, 0  ;;  %p102_p2 = scmp.eq.s32.totalorder %s483_s16, 1 }
   0x7   : > { %p107_p3 = scmp.ne.s32.totalorder %s429_s13, %s425_s12  ;;  %p108_p4 = scmp.eq.s32.totalorder %s318_s17, 1 }
   0x8   : > { %s498_s21 = scalar_select %p89_p1, %s433_s14, %s91_s19  }
   0x9   : > { %p500_p5 = por %p102_p2, %p101_p0  ;;  %p504_p6 = por %p108_p4, %p107_p3 }
   0xa   : > { %p321_p7 = scmp.ge.s32.totalorder %s437_s15, 1  ;;  %p139_p8 = scmp.lt.s32.totalorder %s437_s15, 3 }
   0xc   : > { %p140_p9 = pnand %p321_p7, %p139_p8 }
   0xd   : > { %p162_p10 = scmp.lt.s32.totalorder (!%p140_p9), %s483_s16, 1  ;;  %s159_s4 = sand.u32 (!%p140_p9), 1, %s429_s13  }
   0xe   : > { %143 = sbr.rel (%p140_p9) target bundleno = 232 (0xe8), region = 32  ;;  %s322_s5 = sshll.u32 (!%p140_p9), %s159_s4, 3 }
   0xf   : > { %s326_s8 = sshll.u32 (!%p140_p9), %s483_s16, 7  ;;  %s161_s9 = scalar_lea.vmem (!%p140_p9), [#allocation2], %s322_s5 }
  0x10   : > { %s259_s10 = sshll.u32 (!%p140_p9), %s161_s9, 4  ;;  %s526_s19 = scalar_lea.hbm (!%p140_p9), %s564_s3, %s326_s8  ;;  %s260_s10 = int_to_ptr.vmem [resolvable:$true] %s259_s10 }
  0x11   : > { %s246_s20 = scalar_lea.sflag (!%p140_p9), [#allocation3], %s159_s4  ;;  %s377_s24 = scalar_lea.vmem (!%p140_p9), %s260_s10, 128 }
  0x12   : > { %p378_p11 = scmp.ne.s32.totalorder (!%p140_p9), %s260_s10, %s377_s24 }
  0x13   : > { %v167_v0 = vld [vmem:[%s562_s1] sm:$0xff]  ;;  %v439_v1 = vmov 0.0   ;;  %vm440_vm0 = vmmov 0   ;;  %s163_s26 = scalar_select %p162_p10, %s483_s16, 1  ;;  %vm169_vm1 = vcmask 64512   ;;  %vm243_vm2 = vcmask 261120  }
  0x14   : > { %331 = vmatprep.subr.mxu0 %v439_v1  ;;  %333 = vmatprep.mubr.msk.f32.mxu0 %vm440_vm0, %v439_v1  ;;  %v168_v3 = vld [vmem:[%s563_s2] sm:$0xff]  ;;  %p379_p12 = pnand %p378_p11, %p500_p5  ;;  %s441_s16 = smov [#allocation2]  }
  0x15   : > { %332 = vmatpush3.msra.mxu0 %v167_v0  ;;  %s323_s27 = sshll.u32 %s163_s26, 3  ;;  %s381_s25 = sshll.u32 %s441_s16, 4  ;;  %s382_s25 = int_to_ptr.vmem [resolvable:$false] %s381_s25 }
  0x16   : > { %s165_s30 = scalar_lea.vmem %s561_s0, %s323_s27  ;;  %p380_p13 = pneg %p379_p12 }
  0x17   : > { %v166_v2 = vld [vmem:[%s165_s30] sm:$0xff]  ;;  %s383_s26 = scalar_lea.vmem %s382_s25, 256  ;;  %p384_p0 = scmp.lt.s32.totalorder %s260_s10, %s382_s25 }
  0x18   : > { %334 = vmatmul.mubr.msk.f32.vlgmr.msra.gmra.mxu0 %vm169_vm1, %v166_v2  ;;  %p385_p1 = scmp.lt.s32.totalorder %s383_s26, %s377_s24 }
  0x1a   : > { %p386_p2 = por %p385_p1, %p384_p0 }
  0x1c   : > { %p387_p3 = pnand %p386_p2, %p380_p13 }
  0xd8   : > { %v239_v4 = vpop.f32.mrf.mxu0 }
  0xd9   : > { %v240_v5 = vadd.f32 %v239_v4, %v168_v3 }
  0xda   : > { %v335_v6 = vpop.f32.mrf.mxu0 }
  0xdb   : > { %244 = vst.msk [vmem:[%s161_s9] sm:$0xff] %vm243_vm2, %v240_v5 }
  0xdc   : > { %390 = shalt.err (!%p387_p3)
}
  0xdd   : > { %s391_s27 = scalar_lea.hbm %s526_s19, 128  ;;  %s395_s30 = scalar_lea.hbm %s564_s3, 256 }
  0xde   : > { %p392_p4 = scmp.ne.s32.totalorder %s526_s19, %s391_s27  ;;  %p396_p9 = scmp.lt.s32.totalorder %s526_s19, %s564_s3 }
  0xdf   : > { %p397_p10 = scmp.lt.s32.totalorder %s395_s30, %s391_s27 }
  0xe0   : > { %p393_p7 = pnand %p392_p4, %p500_p5 }
  0xe1   : > { %p398_p11 = por %p397_p10, %p396_p9 }
  0xe2   : > { %p394_p8 = pneg %p393_p7 }
  0xe4   : > { %p399_p12 = pnand %p398_p11, %p394_p8 }
  0xe6   : > { %402 = shalt.err (!%p399_p12)
}
  0xe7   : > { %336 = dma.vmem_to_hbm [thread:$0]  (%p500_p5), %s260_s10, 128, %s526_s19, %s246_s20  }
  0xe8 PF: > { %p342_p13 = scmp.ge.s32.totalorder %s437_s15, 2  ;;  %s271_s6 = sand.u32 1, %s425_s12  }
  0xe9   : > { %s272_s7 = scalar_lea.sflag [#allocation3], %s271_s6 }
  0xea   : > { %p339_p0 = pnand %p342_p13, %p504_p6 }
  0xec   : > { %p340_p1 = pneg %p339_p0 }
  0xee   : > { %420 = dma.done.wait (%p340_p1), %s272_s7, 128  }
  0xef   : > { %422 = vsyncadd (%p340_p1), %s272_s7, 4294967168  ;;  %p13_p2 = scmp.ge.s32.totalorder %s487_s18, 4   ;;  %s567_s12 = smov %s429_s13 }
  0xf0   : > { %s568_s13 = smov %s433_s14  ;;  %s569_s14 = smov %s498_s21 }
  0xf1   : > { %s570_s15 = smov %s487_s18  ;;  %15 = sbr.rel (!%p13_p2) target bundleno = 3 (0x3), region = 67 }
  0xf6   :  { %277 = vsyncpa [#allocation3], 1 }
  0xf7   :  { %279 = vsyncpa [#allocation3 + $0x1], 1 }

</bundles_post_ra>
